<compile_context>
chip_gen: v7x
topology: tpu7x:2x2x1
jax: 0.10.0
libtpu: 0.0.40
codegen_flags: <defaults>
</compile_context>

<pallas_src>
import jax
import jax.numpy as jnp
from jax import lax
from jax.experimental import pallas as pl
from jax.experimental.pallas import tpu as pltpu

LN_EPS = 1e-5


def _round_up(n, m):
    return ((n + m - 1) // m) * m


def _cdiv(a, b):
    return (a + b - 1) // b


# ---------------------------------------------------------------------------
# Kernel
# ---------------------------------------------------------------------------
def ln_linear_kernel(x_ref, gamma_ref, beta_ref, w_ref, b_ref, o_ref):
    # x_ref:     (TB, D)
    # gamma_ref: (1, D) f32     beta_ref: (1, D) f32
    # w_ref:     (D, CP)        pre-transposed, lane-dense CP, bf16 by default
    # b_ref:     (1, CP) f32
    # o_ref:     (TB, CP)
    x = x_ref[...].astype(jnp.float32)
    d = x.shape[-1]

    # Two-pass LayerNorm (matches torch: biased variance of centered x).
    mean = jnp.sum(x, axis=-1, keepdims=True) * (1.0 / d)
    xc = x - mean
    var = jnp.sum(xc * xc, axis=-1, keepdims=True) * (1.0 / d)
    xn = xc * lax.rsqrt(var + LN_EPS)
    y = xn * gamma_ref[...] + beta_ref[...]

    # Linear: y(TB, D) @ W(D, CP) -> (TB, CP).  bf16 operands, f32 accumulate.
    w = w_ref[...]
    y_mm = y if w.dtype == y.dtype else y.astype(w.dtype)
    out = lax.dot_general(
        y_mm, w,
        dimension_numbers=(((1,), (0,)), ((), ())),
        preferred_element_type=jnp.float32,
    )
    out = out + b_ref[...]
    o_ref[...] = out.astype(o_ref.dtype)


# ---------------------------------------------------------------------------
# One-time parameter preparation (hoisted out of the per-call path)
# ---------------------------------------------------------------------------
def prepare_probe_params(gamma, beta, weight, bias, *, mm_dtype=jnp.bfloat16):
    """Pad / transpose / cast the fixed probe-head parameters once."""
    C, D = weight.shape
    CP = _round_up(max(C, 1), 128)
    w_t = jnp.pad(weight, ((0, CP - C), (0, 0))).T.astype(mm_dtype)   # (D, CP)
    b_p = jnp.pad(bias, (0, CP - C)).reshape(1, CP).astype(jnp.float32)
    gamma2 = gamma.reshape(1, D).astype(jnp.float32)
    beta2 = beta.reshape(1, D).astype(jnp.float32)
    return {"gamma": gamma2, "beta": beta2, "w_t": w_t, "bias": b_p,
            "C": C, "D": D, "CP": CP}


def _choose_tile_and_vmem(B, D, CP, x_bytes, w_bytes, out_bytes, block_b):
    """Pick a batch tile that (a) gives >=4 grid steps when B allows it and
    (b) fits a conservative VMEM budget; return (TB, vmem_limit_bytes)."""
    budget = 40 * 1024 * 1024          # safe on v7x (64 MiB/TC) and v5e/v6e
    tb = min(block_b, max(8, _round_up(_cdiv(B, 4), 8)))

    def est(t):
        x_buf = 2 * t * D * x_bytes                    # x double-buffer
        out_buf = 2 * t * CP * out_bytes               # output double-buffer
        params = 2 * (D * CP * w_bytes + 2 * D * 4 + CP * 4)
        return x_buf + out_buf + params

    while tb > 8 and est(tb) > budget:
        tb = max(8, _round_up(tb // 2, 8))
    # TODO(synk): for very large C*D heads that overflow even at TB=8, add a
    # CP grid axis so W streams instead of staying resident.
    vmem_limit = min(56 * 1024 * 1024,
                     max(32 * 1024 * 1024, est(tb) + (8 << 20)))
    return tb, vmem_limit


# ---------------------------------------------------------------------------
# Wrappers
# ---------------------------------------------------------------------------
def linear_probe_prepared(x, params, *, block_b=512):
    """x: (..., D) with prepared params from prepare_probe_params."""
    D, C, CP = params["D"], params["C"], params["CP"]
    lead_shape = x.shape[:-1]
    x2 = x.reshape(-1, D)
    B = x2.shape[0]

    w_t = params["w_t"]
    tb, vmem_limit = _choose_tile_and_vmem(
        B, D, CP, x2.dtype.itemsize, w_t.dtype.itemsize, x2.dtype.itemsize,
        block_b)
    grid = (pl.cdiv(B, tb),)

    out = pl.pallas_call(
        ln_linear_kernel,
        out_shape=jax.ShapeDtypeStruct((B, CP), x2.dtype),
        grid=grid,
        in_specs=[
            pl.BlockSpec((tb, D), lambda i: (i, 0)),     # x streams (ragged ok)
            pl.BlockSpec((1, D), lambda i: (0, 0)),      # gamma resident
            pl.BlockSpec((1, D), lambda i: (0, 0)),      # beta resident
            pl.BlockSpec((D, CP), lambda i: (0, 0)),     # W^T resident
            pl.BlockSpec((1, CP), lambda i: (0, 0)),     # bias resident
        ],
        out_specs=pl.BlockSpec((tb, CP), lambda i: (i, 0)),
        compiler_params=pltpu.CompilerParams(
            dimension_semantics=("parallel",),           # megacore on v7x
            vmem_limit_bytes=vmem_limit,
        ),
    )(x2, params["gamma"], params["beta"], w_t, params["bias"])

    return out[:, :C].reshape(*lead_shape, C)


def linear_probe(x, gamma, beta, weight, bias, *, mm_dtype=jnp.bfloat16,
                 block_b=512):
    """Convenience one-shot wrapper (prefer prepare_probe_params + prepared
    call when the head is reused across many batches)."""
    params = prepare_probe_params(gamma, beta, weight, bias, mm_dtype=mm_dtype)
    return linear_probe_prepared(x, params, block_b=block_b)


# ---------------------------------------------------------------------------
# Demo / correctness check
# ---------------------------------------------------------------------------
if __name__ == "__main__":
    key = jax.random.PRNGKey(0)
    k_x, k_w, k_b = jax.random.split(key, 3)

    B = 8          # batch
    D = 32         # dimension
    C = 10         # class_number

    x = jax.random.normal(k_x, (B, D), dtype=jnp.float32)

    # LayerNorm params (ones/zeros) and Linear params (torch-ish uniform init).
    gamma = jnp.ones((D,), dtype=jnp.float32)
    beta = jnp.zeros((D,), dtype=jnp.float32)
    bound = 1.0 / (D ** 0.5)
    weight = jax.random.uniform(k_w, (C, D), minval=-bound, maxval=bound,
                                dtype=jnp.float32)
    bias = jax.random.uniform(k_b, (C,), minval=-bound, maxval=bound,
                              dtype=jnp.float32)

    # Prepare the fixed head once, then run the kernel.
    params = prepare_probe_params(gamma, beta, weight, bias,
                                  mm_dtype=jnp.bfloat16)
    out = linear_probe_prepared(x, params)
    out = jax.block_until_ready(out)
    assert out.shape == (B, C)

    # Reference LayerNorm in plain JAX (f32).
    mean = jnp.mean(x, axis=-1, keepdims=True)
    var = jnp.mean((x - mean) ** 2, axis=-1, keepdims=True)
    xn = (x - mean) / jnp.sqrt(var + LN_EPS)
    y = xn * gamma + beta

    # (a) Tight check against a bf16-matmul-matched reference (f32 accumulate).
    ref_bf16 = jnp.dot(y.astype(jnp.bfloat16), weight.T.astype(jnp.bfloat16),
                       preferred_element_type=jnp.float32) + bias
    assert jnp.allclose(out, ref_bf16, atol=1e-4, rtol=1e-4)

    # (b) Loose sanity check against the full-f32 torch-equivalent reference.
    ref_f32 = y @ weight.T + bias
    assert jnp.allclose(out, ref_f32, atol=2e-2, rtol=2e-2)

    print("KERNEL_OK")
</pallas_src>

<mosaic_0001>
module attributes {stable_mosaic.version = 11 : i64} {
  func.func @ln_linear_kernel(%arg0: i32, %arg1: memref<8x32xf32, #tpu.memory_space<vmem>>, %arg2: memref<1x32xf32, #tpu.memory_space<vmem>>, %arg3: memref<1x32xf32, #tpu.memory_space<vmem>>, %arg4: memref<32x128xbf16, #tpu.memory_space<vmem>>, %arg5: memref<1x128xf32, #tpu.memory_space<vmem>>, %arg6: memref<8x128xf32, #tpu.memory_space<vmem>>) attributes {dimension_semantics = [#tpu.dimension_semantics<parallel>], iteration_bounds = array<i64: 1>, scalar_prefetch = 0 : i64, scratch_operands = 0 : i64, tpu.core_type = #tpu.core_type<tc>, window_params = [{transform_indices = @transform_0, window_bounds = array<i64: 8, 32>}, {pipeline_mode = #tpu.pipeline_mode<synchronous>, transform_indices = @transform_1, window_bounds = array<i64: 1, 32>}, {pipeline_mode = #tpu.pipeline_mode<synchronous>, transform_indices = @transform_2, window_bounds = array<i64: 1, 32>}, {pipeline_mode = #tpu.pipeline_mode<synchronous>, transform_indices = @transform_3, window_bounds = array<i64: 32, 128>}, {pipeline_mode = #tpu.pipeline_mode<synchronous>, transform_indices = @transform_4, window_bounds = array<i64: 1, 128>}, {transform_indices = @transform_5, window_bounds = array<i64: 8, 128>}]} {
    %c0 = arith.constant 0 : index
    %c0_0 = arith.constant 0 : index
    %0 = vector.load %arg1[%c0, %c0_0] : memref<8x32xf32, #tpu.memory_space<vmem>>, vector<8x32xf32>
    %cst = arith.constant dense<0.000000e+00> : vector<8xf32>
    %1 = vector.multi_reduction <add>, %0, %cst [1] : vector<8x32xf32> to vector<8xf32>
    %2 = vector.shape_cast %1 : vector<8xf32> to vector<8x1xf32>
    %cst_1 = arith.constant 3.125000e-02 : f32
    %3 = vector.broadcast %cst_1 : f32 to vector<8x1xf32>
    %4 = arith.mulf %2, %3 : vector<8x1xf32>
    %5 = vector.broadcast %4 : vector<8x1xf32> to vector<8x32xf32>
    %6 = arith.subf %0, %5 : vector<8x32xf32>
    %7 = arith.mulf %6, %6 : vector<8x32xf32>
    %cst_2 = arith.constant dense<0.000000e+00> : vector<8xf32>
    %8 = vector.multi_reduction <add>, %7, %cst_2 [1] : vector<8x32xf32> to vector<8xf32>
    %9 = vector.shape_cast %8 : vector<8xf32> to vector<8x1xf32>
    %cst_3 = arith.constant 3.125000e-02 : f32
    %10 = vector.broadcast %cst_3 : f32 to vector<8x1xf32>
    %11 = arith.mulf %9, %10 : vector<8x1xf32>
    %cst_4 = arith.constant 9.99999974E-6 : f32
    %12 = vector.broadcast %cst_4 : f32 to vector<8x1xf32>
    %13 = arith.addf %11, %12 : vector<8x1xf32>
    %14 = math.rsqrt %13 : vector<8x1xf32>
    %15 = vector.broadcast %14 : vector<8x1xf32> to vector<8x32xf32>
    %16 = arith.mulf %6, %15 : vector<8x32xf32>
    %c0_5 = arith.constant 0 : index
    %c0_6 = arith.constant 0 : index
    %17 = vector.load %arg2[%c0_5, %c0_6] : memref<1x32xf32, #tpu.memory_space<vmem>>, vector<1x32xf32>
    %18 = vector.broadcast %17 : vector<1x32xf32> to vector<8x32xf32>
    %19 = arith.mulf %16, %18 : vector<8x32xf32>
    %c0_7 = arith.constant 0 : index
    %c0_8 = arith.constant 0 : index
    %20 = vector.load %arg3[%c0_7, %c0_8] : memref<1x32xf32, #tpu.memory_space<vmem>>, vector<1x32xf32>
    %21 = vector.broadcast %20 : vector<1x32xf32> to vector<8x32xf32>
    %22 = arith.addf %19, %21 : vector<8x32xf32>
    %c0_9 = arith.constant 0 : index
    %c0_10 = arith.constant 0 : index
    %23 = vector.load %arg4[%c0_9, %c0_10] : memref<32x128xbf16, #tpu.memory_space<vmem>>, vector<32x128xbf16>
    %24 = arith.truncf %22 : vector<8x32xf32> to vector<8x32xbf16>
    %cst_11 = arith.constant dense<0.000000e+00> : vector<8x128xf32>
    %25 = tpu.matmul %24, %23, %cst_11 {dimension_numbers = #tpu.dot_dimension_numbers<[1], [0], [0], [1], [0, 0, 1, 1], [], []>} : vector<8x32xbf16>, vector<32x128xbf16>, vector<8x128xf32> -> vector<8x128xf32>
    %c0_12 = arith.constant 0 : index
    %c0_13 = arith.constant 0 : index
    %26 = vector.load %arg5[%c0_12, %c0_13] : memref<1x128xf32, #tpu.memory_space<vmem>>, vector<1x128xf32>
    %27 = vector.broadcast %26 : vector<1x128xf32> to vector<8x128xf32>
    %28 = arith.addf %25, %27 : vector<8x128xf32>
    %c0_14 = arith.constant 0 : index
    %c0_15 = arith.constant 0 : index
    %29 = vector.load %arg6[%c0_14, %c0_15] : memref<8x128xf32, #tpu.memory_space<vmem>>, vector<8x128xf32>
    tpu.vector_store %arg6[%c0_14, %c0_15], %28 {strides = array<i32>} : memref<8x128xf32, #tpu.memory_space<vmem>>, vector<8x128xf32>,
    return
  }
  func.func @transform_0(%arg0: i32) -> (i32, i32) {
    %c0_i32 = arith.constant 0 : i32
    %c0_i32_0 = arith.constant 0 : i32
    return %arg0, %c0_i32 : i32, i32
  }
  func.func @transform_1(%arg0: i32) -> (i32, i32) {
    %c0_i32 = arith.constant 0 : i32
    %c0_i32_0 = arith.constant 0 : i32
    %c0_i32_1 = arith.constant 0 : i32
    return %c0_i32, %c0_i32_0 : i32, i32
  }
  func.func @transform_2(%arg0: i32) -> (i32, i32) {
    %c0_i32 = arith.constant 0 : i32
    %c0_i32_0 = arith.constant 0 : i32
    %c0_i32_1 = arith.constant 0 : i32
    return %c0_i32, %c0_i32_0 : i32, i32
  }
  func.func @transform_3(%arg0: i32) -> (i32, i32) {
    %c0_i32 = arith.constant 0 : i32
    %c0_i32_0 = arith.constant 0 : i32
    %c0_i32_1 = arith.constant 0 : i32
    return %c0_i32, %c0_i32_0 : i32, i32
  }
  func.func @transform_4(%arg0: i32) -> (i32, i32) {
    %c0_i32 = arith.constant 0 : i32
    %c0_i32_0 = arith.constant 0 : i32
    %c0_i32_1 = arith.constant 0 : i32
    return %c0_i32, %c0_i32_0 : i32, i32
  }
  func.func @transform_5(%arg0: i32) -> (i32, i32) {
    %c0_i32 = arith.constant 0 : i32
    %c0_i32_0 = arith.constant 0 : i32
    return %arg0, %c0_i32 : i32, i32
  }
}

</mosaic_0001>

<bundles_post_ra>
// kernel: tpu_custom_call.1
= control target key start
LH: loop header
LB: loop body
LE: loop exit
PB: predicated region body
PF: predicated region fallthrough
CT: control target
= control target key end

     0   :  { %10 = vsyncpa [#allocation3], 0  ;;  %s355_s0 = inlined_call_operand.hbm [shape: f32[8,32], index: 0, kind: input, shape index: {}]   ;;  %s356_s1 = inlined_call_operand.vmem [shape: f32[1,32], index: 1, kind: input, shape index: {}]   ;;  %s357_s2 = inlined_call_operand.vmem [shape: f32[1,32], index: 2, kind: input, shape index: {}]   ;;  %s358_s3 = inlined_call_operand.hbm [shape: bf16[32,128], index: 3, kind: input, shape index: {}]   ;;  %s359_s4 = inlined_call_operand.vmem [shape: f32[1,128], index: 4, kind: input, shape index: {}]   ;;  %s360_s5 = inlined_call_operand.hbm [shape: f32[8,128], index: 5, kind: output, shape index: {}]  }
   0x1   :  { %11 = vsyncpa [#allocation6], 0 }
   0x2   :  { %12 = vsyncpa [#allocation4], 0  ;;  %s263_s18 = smov [#allocation2]   ;;  %s264_s20 = smov [#allocation5]  }
   0x3   :  { %s19_s19 = sshll.u32 %s263_s18, 4  ;;  %s32_s21 = sshll.u32 %s264_s20, 4  ;;  %s20_s19 = int_to_ptr.vmem [resolvable:$true] %s19_s19  ;;  %s300_s21 = int_to_ptr.vmem [resolvable:$true] %s32_s21 }
   0x4   :  { %s191_s24 = scalar_lea.hbm %s355_s0, 128 }
   0x5   :  { %p192_p0 = scmp.ne.s32.totalorder %s355_s0, %s191_s24  ;;  %p195_p1 = scmp.lt.u32.totalorder %s191_s24, %s355_s0 }
   0x7   :  { %p197_p2 = pnand %p195_p1, %p192_p0 }
   0x9   :  { %200 = shalt.err (!%p197_p2)
}
   0xa   :  { %s201_s29 = scalar_lea.vmem %s20_s19, 128  ;;  %p206_p4 = scmp.lt.s32.totalorder %s20_s19, %s20_s19 }
   0xb   :  { %p202_p3 = scmp.ne.s32.totalorder %s20_s19, %s201_s29  ;;  %p207_p5 = scmp.lt.s32.totalorder %s201_s29, %s201_s29 }
   0xd   :  { %p208_p6 = por %p207_p5, %p206_p4 }
   0xf   :  { %p209_p7 = pnand %p208_p6, %p202_p3 }
  0x11   :  { %212 = shalt.err (!%p209_p7)
}
  0x12   :  { %22 = dma.hbm_to_vmem [thread:$0]  %s355_s0, 128, %s20_s19, [#allocation3]  }
  0x13   :  { %s213_s9 = scalar_lea.hbm %s358_s3, 256 }
  0x14   :  { %p214_p8 = scmp.ne.s32.totalorder %s358_s3, %s213_s9  ;;  %p217_p9 = scmp.lt.u32.totalorder %s213_s9, %s358_s3 }
  0x16   :  { %p219_p10 = pnand %p217_p9, %p214_p8 }
  0x18   :  { %222 = shalt.err (!%p219_p10)
}
  0x19   :  { %s223_s14 = scalar_lea.vmem %s300_s21, 256  ;;  %p228_p12 = scmp.lt.s32.totalorder %s300_s21, %s300_s21 }
  0x1a   :  { %p224_p11 = scmp.ne.s32.totalorder %s300_s21, %s223_s14  ;;  %p229_p13 = scmp.lt.s32.totalorder %s223_s14, %s223_s14 }
  0x1c   :  { %p230_p0 = por %p229_p13, %p228_p12 }
  0x1e   :  { %p231_p1 = pnand %p230_p0, %p224_p11 }
  0x20   :  { %234 = shalt.err (!%p231_p1)
}
  0x21   :  { %s265_s0 = smov 64   ;;  %s266_s15 = smov 4  }
  0x22   :  { %38 = dma.hbm_to_vmem [thread:$0]  %s358_s3, 256, %s300_s21, [#allocation6], %s265_s0, %s265_s0, %s266_s15  }
  0x23   :  { %257 = dma.done.wait [#allocation3], 128  }
  0x24   :  { %258 = vsyncadd [#allocation3], 4294967168 }
  0x25   :  { %259 = dma.done.wait [#allocation6], 256  }
  0x26   :  { %260 = vsyncadd [#allocation6], 4294967040  ;;  %vm49_vm0 = vcmask 261120   ;;  %v48_v0 = vld [vmem:[#allocation2] sm:$0xff]  ;;  %v187_v7 = vld [vmem:[#allocation5] sm:$0xff]   ;;  %v267_v8 = vmov 0.0  }
  0x27   :  { %v50_v1 = vsel %vm49_vm0, %v48_v0, 0.0  ;;  %172 = vmatprep.subr.bf16.mxu0 %v267_v8  ;;  %v188_v9 = vld [vmem:[#allocation5 + $0x8] sm:$0xff]   ;;  %vm268_vm1 = vmmov 0   ;;  %v163_v14 = vld [vmem:[%s356_s1] ss:$0 sm:$0xff]  ;;  %s269_s23 = smov [#allocation7]  }
  0x28   :  { %51 = vadd.xlane.f32.xlu0 %v50_v1  ;;  %173 = vmatpush3.bf16.msra.mxu0 %v187_v7  ;;  %v164_v16 = vld [vmem:[%s357_s2] ss:$0 sm:$0xff]  ;;  %s153_s24 = sshll.u32 %s269_s23, 4  ;;  %s154_s24 = int_to_ptr.vmem [resolvable:$true] %s153_s24 }
  0x29   :  { %176 = vmatprep.mubr.msk.bf16.mxu0 %vm268_vm1, %v267_v8  ;;  %174 = vmatprep.subr.bf16.mxu0 %v267_v8  ;;  %v165_v20 = vld [vmem:[%s359_s4] ss:$0 sm:$0xff]  ;;  %s235_s1 = scalar_lea.vmem %s154_s24, 128  ;;  %p240_p3 = scmp.lt.s32.totalorder %s154_s24, %s154_s24 }
  0x2a   :  { %p236_p2 = scmp.ne.s32.totalorder %s154_s24, %s235_s1  ;;  %p241_p4 = scmp.lt.s32.totalorder %s235_s1, %s235_s1 }
  0x2c   :  { %175 = vmatpush3.bf16.msra.mxu0 %v188_v9  ;;  %p242_p5 = por %p241_p4, %p240_p3 }
  0x2e   :  { %p243_p6 = pnand %p242_p5, %p236_p2 }
  0xb5   :  { %v52_v2 = vpop.xlane.xlu0 %51 }
  0xb6   :  { %v53_v3 = vmul.f32 0.03125, %v52_v2 }
  0xb8   :  { %v54_v4 = vsub.f32 %v48_v0, %v53_v3 }
  0xba   :  { %v55_v5 = vmul.f32 %v54_v4, %v54_v4 }
  0xbc   :  { %v56_v6 = vsel %vm49_vm0, %v55_v5, 0.0 }
  0xbd   :  { %57 = vadd.xlane.f32.xlu0 %v56_v6 }
 0x14a   :  { %v58_v10 = vpop.xlane.xlu0 %57 }
 0x14b   :  { %v59_v11 = vmul.f32 0.03125, %v58_v10 }
 0x14d   :  { %v60_v12 = vadd.f32 1e-05, %v59_v11 }
 0x14f   :  { %189 = vrsqrt.f32 %v60_v12 }
 0x159   :  { %v190_v13 = vpop.eup %189 }
 0x15a   :  { %v62_v15 = vmul.f32 %v190_v13, %v54_v4 }
 0x15c   :  { %v70_v17 = vmul.f32 %v163_v14, %v62_v15 }
 0x15e   :  { %v78_v18 = vadd.f32 %v164_v16, %v70_v17 }
 0x160   :  { %v83_v19 = vpack.c.bf16 %v78_v18, %v78_v18 }
 0x162   :  { %177 = vmatmul.mubr.msk.bf16.vlgmr.msra.gmra.mrb[0].mxu0 %vm49_vm0, %v83_v19 }
 0x235   :  { %v140_v21 = vpop.f32.mrb[0].mxu0 }
 0x236   :  { %v141_v22 = vadd.f32 %v165_v20, %v140_v21  ;;  %v178_v23 = vpop.f32.mrb[1].mxu0 }
 0x237   :  { %v143_v24 = vpop.f32.mrb[2].mxu0 }
 0x238   :  { %146 = vst [vmem:[#allocation7] sm:$0xff] %v141_v22  ;;  %v179_v25 = vpop.f32.mrb[3].mxu0 }
 0x239   :  { %246 = shalt.err (!%p243_p6)
}
 0x23a   :  { %s247_s4 = scalar_lea.hbm %s360_s5, 128 }
 0x23b   :  { %p248_p7 = scmp.ne.s32.totalorder %s360_s5, %s247_s4  ;;  %p251_p8 = scmp.lt.u32.totalorder %s247_s4, %s360_s5 }
 0x23d   :  { %p253_p9 = pnand %p251_p8, %p248_p7 }
 0x23f   :  { %256 = shalt.err (!%p253_p9)
}
 0x240   :  { %156 = dma.vmem_to_hbm [thread:$0]  %s154_s24, 128, %s360_s5, [#allocation4]  }
 0x241   :  { %261 = dma.done.wait [#allocation4], 128  }
 0x242   :  { %262 = vsyncadd [#allocation4], 4294967168 }
 0x243   :  { %160 = vsyncpa [#allocation3], 1 }
 0x244   :  { %161 = vsyncpa [#allocation6], 1 }
 0x245   :  { %162 = vsyncpa [#allocation4], 1 }

</bundles_post_ra>
